<compile_context>
chip_gen: v7x
topology: tpu7x:2x2x1
jax: 0.10.0
libtpu: 0.0.40
codegen_flags: <defaults>
</compile_context>

<pallas_src>
import jax
import jax.numpy as jnp
import numpy as np
from jax.experimental import pallas as pl
from jax.experimental.pallas import tpu as pltpu


MAX_TP = 8192               # upper bound on the point (lane) tile, mult of 128
OUT_TILE_BUDGET = 6 << 20   # per-buffer VMEM budget for the f32 output tile
PT_ROWS = 8                 # packed per-point rows: x, y, 1/stride, 5 x pad
GT_COLS = 8                 # packed per-gt cols (see kernel docstring)


def _round_up(x, m):
    return ((x + m - 1) // m) * m


def _choose_point_tile(num_points, ng_pad):
    """Pick the point (lane) tile.

    Largest tile that (a) fits the VMEM budget for the double-buffered
    [ng_pad, tp] f32 output block, (b) is <= MAX_TP, and (c) leaves >= 2 grid
    steps on the parallel point axis when the point count allows it (v7x dual
    TensorCore; costs at most one extra ~0.35us step on single-TC v5e/v6e).
    Tile is rounded to a multiple of 128 and sized to minimize lane padding.
    """
    np128 = _round_up(max(num_points, 1), 128)
    tp_vmem = max(128, (OUT_TILE_BUDGET // (ng_pad * 4)) // 128 * 128)
    tp_max = min(MAX_TP, tp_vmem, np128)
    nsteps = -(-np128 // tp_max)
    if np128 >= 256:
        nsteps = max(nsteps, 2)
    tp = _round_up(-(-np128 // nsteps), 128)
    grid0 = -(-np128 // tp)
    np_pad = grid0 * tp
    return tp, np_pad, grid0


def _center_prior_kernel(pts_ref, gt_ref, out_ref):
    """w = exp(-(((p - c)/s - mu)_x^2/(2*sx^2) + ((p - c)/s - mu)_y^2/(2*sy^2)))

    Transposed layout: gts on sublanes, points on lanes (lane-dense stores).

    pts_ref : [8, TP]       rows: x, y, 1/stride, pad...
    gt_ref  : [NG_PAD, 8]   cols: cx, cy, mean_x, mean_y,
                                  -1/(2*sigma_x^2), -1/(2*sigma_y^2), pad, pad
    out_ref : [NG_PAD, TP]  unmasked center-prior weights (f32)
    """
    px = pts_ref[0:1, :]                # [1, TP]
    py = pts_ref[1:2, :]
    # Broadcast 1/stride exactly once (Mosaic does not CSE broadcast_in_dim).
    inv_s = jnp.broadcast_to(pts_ref[2:3, :], out_ref.shape)   # [NG, TP]

    cx = gt_ref[:, 0:1]                 # [NG, 1]
    cy = gt_ref[:, 1:2]
    mx = gt_ref[:, 2:3]
    my = gt_ref[:, 3:4]
    neg_inv_2sx2 = gt_ref[:, 4:5]       # -1/(2*sigma_x^2), negation pre-folded
    neg_inv_2sy2 = gt_ref[:, 5:6]

    dx = (px - cx) * inv_s - mx         # [NG, TP]
    dy = (py - cy) * inv_s - my
    out_ref[...] = jnp.exp(dx * dx * neg_inv_2sx2 + dy * dy * neg_inv_2sy2)


def center_prior_forward(anchor_points_list, strides, gt_bboxes, labels,
                         inside_gt_bbox_mask, mean_param, sigma_param):
    """Pallas implementation of CenterPrior.forward (force_topk=False path).

    Returns (center_prior_weights [num_points, num_gt] f32,
             inside_gt_bbox_mask   [num_points, num_gt] bool).
    """
    num_gts = int(labels.shape[0])
    num_points = sum(int(p.shape[0]) for p in anchor_points_list)
    if num_gts == 0:
        return jnp.zeros((num_points, 0), jnp.float32), inside_gt_bbox_mask

    ng_pad = _round_up(num_gts, 8)
    tp, np_pad, grid0 = _choose_point_tile(num_points, ng_pad)

    # ---- per-point rows [8, np_pad]: x, y, 1/stride, zeros ------------------
    pts = jnp.concatenate(anchor_points_list, axis=0).astype(jnp.float32)
    inv_stride = jnp.concatenate(
        [jnp.full((int(p.shape[0]),), 1.0 / float(s), jnp.float32)
         for p, s in zip(anchor_points_list, strides)], axis=0)
    pts_rows = jnp.stack([pts[:, 0], pts[:, 1], inv_stride], axis=0)  # [3, np]
    # padded lanes get x=y=inv_s=0 -> finite weight, sliced away below
    pts_rows = jnp.pad(pts_rows,
                       ((0, PT_ROWS - 3), (0, np_pad - num_points)))

    # ---- per-gt cols [ng_pad, 8]: grid-invariant math hoisted, neg folded ---
    gt_bboxes = gt_bboxes.astype(jnp.float32)
    gt_cx = (gt_bboxes[:, 0] + gt_bboxes[:, 2]) * 0.5
    gt_cy = (gt_bboxes[:, 1] + gt_bboxes[:, 3]) * 0.5
    inst_mean = mean_param[labels].astype(jnp.float32)        # [NG, 2]
    inst_sigma = sigma_param[labels].astype(jnp.float32)      # [NG, 2]
    neg_inv_2sx2 = -1.0 / (2.0 * inst_sigma[:, 0] ** 2)
    neg_inv_2sy2 = -1.0 / (2.0 * inst_sigma[:, 1] ** 2)
    zeros_g = jnp.zeros_like(gt_cx)
    gt_cols = jnp.stack(
        [gt_cx, gt_cy, inst_mean[:, 0], inst_mean[:, 1],
         neg_inv_2sx2, neg_inv_2sy2, zeros_g, zeros_g], axis=1)  # [NG, 8]
    # padded gt rows: all-zero constants -> weight 1, sliced away below
    gt_cols = jnp.pad(gt_cols, ((0, ng_pad - num_gts), (0, 0)))

    weights_t = pl.pallas_call(
        _center_prior_kernel,
        out_shape=jax.ShapeDtypeStruct((ng_pad, np_pad), jnp.float32),
        grid_spec=pltpu.PrefetchScalarGridSpec(
            num_scalar_prefetch=0,
            grid=(grid0,),
            in_specs=[
                pl.BlockSpec((PT_ROWS, tp), lambda i: (0, i)),
                pl.BlockSpec((ng_pad, GT_COLS), lambda i: (0, 0)),
            ],
            out_specs=pl.BlockSpec((ng_pad, tp), lambda i: (0, i)),
        ),
        compiler_params=pltpu.CompilerParams(
            dimension_semantics=("parallel",)),
    )(pts_rows, gt_cols)

    # Single fused slice + transpose + mask pass back to the caller's
    # [num_points, num_gt] layout (no int8 cast/pad, no separate slice copy).
    center_prior_weights = jnp.where(
        inside_gt_bbox_mask, weights_t[:num_gts, :num_points].T, 0.0)
    # TODO(synk): force_topk=True branch (data-dependent top-k scatter into the
    # mask) is not implemented; the module default is force_topk=False.
    return center_prior_weights.astype(jnp.float32), inside_gt_bbox_mask


# ----------------------------- test utilities --------------------------------

def _reference(anchor_points_list, strides, gt_bboxes, labels,
               inside_gt_bbox_mask, mean_param, sigma_param):
    """Pure-JAX reference mirroring the PyTorch forward (force_topk=False)."""
    gt_cx = (gt_bboxes[:, 0] + gt_bboxes[:, 2]) * 0.5
    gt_cy = (gt_bboxes[:, 1] + gt_bboxes[:, 3]) * 0.5
    gt_center = jnp.stack([gt_cx, gt_cy], axis=1)[None]       # [1, NG, 2]
    inst_mean = mean_param[labels][None]                      # [1, NG, 2]
    inst_sigma = sigma_param[labels][None]
    outs = []
    for slvl_points, stride in zip(anchor_points_list, strides):
        p = slvl_points[:, None, :]                           # [P, 1, 2]
        d = ((p - gt_center) / float(stride) - inst_mean) ** 2
        outs.append(jnp.prod(jnp.exp(-d / (2 * inst_sigma ** 2)), axis=-1))
    w = jnp.concatenate(outs, axis=0)
    return jnp.where(inside_gt_bbox_mask, w, 0.0)


def _make_anchor_points(h, w, stride):
    ys = (jnp.arange(h, dtype=jnp.float32) + 0.5) * stride
    xs = (jnp.arange(w, dtype=jnp.float32) + 0.5) * stride
    yy, xx = jnp.meshgrid(ys, xs, indexing="ij")
    return jnp.stack([xx.reshape(-1), yy.reshape(-1)], axis=-1)   # [h*w, 2]


def _run_case(level_hw, strides, num_gt, key, num_classes=80):
    ks = jax.random.split(key, 5)
    anchor_points_list = [_make_anchor_points(h, w, s)
                          for (h, w), s in zip(level_hw, strides)]
    num_points = sum(int(p.shape[0]) for p in anchor_points_list)
    img = max(h * s for (h, w), s in zip(level_hw, strides))

    xy1 = jax.random.uniform(ks[0], (num_gt, 2), minval=0.0, maxval=0.6 * img)
    wh = jax.random.uniform(ks[1], (num_gt, 2), minval=0.1 * img,
                            maxval=0.5 * img)
    gt_bboxes = jnp.concatenate([xy1, xy1 + wh], axis=-1)      # [NG, 4] xyxy
    labels = jax.random.randint(ks[2], (num_gt,), 0, num_classes)

    all_pts = jnp.concatenate(anchor_points_list, axis=0)
    px, py = all_pts[:, 0:1], all_pts[:, 1:2]
    inside_gt_bbox_mask = ((px >= gt_bboxes[None, :, 0].reshape(1, -1)) &
                           (px <= gt_bboxes[None, :, 2].reshape(1, -1)) &
                           (py >= gt_bboxes[None, :, 1].reshape(1, -1)) &
                           (py <= gt_bboxes[None, :, 3].reshape(1, -1)))

    # non-trivial learned params to exercise mean/sigma paths
    mean_param = 0.1 * jax.random.normal(ks[3], (num_classes, 2),
                                         dtype=jnp.float32)
    sigma_param = 1.0 + 0.5 * jax.random.uniform(ks[4], (num_classes, 2),
                                                 dtype=jnp.float32)

    weights, out_mask = center_prior_forward(
        anchor_points_list, strides, gt_bboxes, labels,
        inside_gt_bbox_mask, mean_param, sigma_param)
    weights = jax.block_until_ready(weights)

    ref = _reference(anchor_points_list, strides, gt_bboxes, labels,
                     inside_gt_bbox_mask, mean_param, sigma_param)
    assert weights.shape == (num_points, num_gt)
    assert out_mask.shape == (num_points, num_gt)
    np.testing.assert_allclose(np.asarray(weights), np.asarray(ref),
                               rtol=1e-5, atol=1e-6)


if __name__ == "__main__":
    key = jax.random.PRNGKey(0)
    k1, k2, k3 = jax.random.split(key, 3)

    # case 1: tiny (single point tile, single gt block)
    _run_case([(4, 4), (2, 2)], (8, 16), num_gt=3, key=k1)

    # case 2: multiple point (lane) tiles (336 points -> 2 parallel steps)
    _run_case([(16, 16), (8, 8), (4, 4)], (8, 16, 32), num_gt=5, key=k2)

    # case 3: num_gt > 128 exercises a tall gt (sublane) block
    _run_case([(8, 8), (4, 4)], (8, 16), num_gt=140, key=k3)

    # case 4: zero-gt early-return path
    pts_list = [_make_anchor_points(4, 4, 8)]
    w0, m0 = center_prior_forward(
        pts_list, (8,), jnp.zeros((0, 4), jnp.float32),
        jnp.zeros((0,), jnp.int32), jnp.zeros((16, 0), bool),
        jnp.zeros((80, 2), jnp.float32), jnp.ones((80, 2), jnp.float32))
    assert w0.shape == (16, 0) and m0.shape == (16, 0)

    print("KERNEL_OK")
</pallas_src>

<mosaic_0001>
module attributes {stable_mosaic.version = 11 : i64} {
  func.func @_center_prior_kernel(%arg0: i32, %arg1: memref<8x128xf32, #tpu.memory_space<vmem>>, %arg2: memref<8x8xf32, #tpu.memory_space<vmem>>, %arg3: memref<8x128xf32, #tpu.memory_space<vmem>>) attributes {dimension_semantics = [#tpu.dimension_semantics<parallel>], iteration_bounds = array<i64: 1>, scalar_prefetch = 0 : i64, scratch_operands = 0 : i64, tpu.core_type = #tpu.core_type<tc>, window_params = [{transform_indices = @transform_0, window_bounds = array<i64: 8, 128>}, {pipeline_mode = #tpu.pipeline_mode<synchronous>, transform_indices = @transform_1, window_bounds = array<i64: 8, 8>}, {transform_indices = @transform_2, window_bounds = array<i64: 8, 128>}]} {
    %c0 = arith.constant 0 : index
    %c0_0 = arith.constant 0 : index
    %0 = vector.load %arg1[%c0, %c0_0] : memref<8x128xf32, #tpu.memory_space<vmem>>, vector<1x128xf32>
    %c1 = arith.constant 1 : index
    %c0_1 = arith.constant 0 : index
    %1 = vector.load %arg1[%c1, %c0_1] : memref<8x128xf32, #tpu.memory_space<vmem>>, vector<1x128xf32>
    %c2 = arith.constant 2 : index
    %c0_2 = arith.constant 0 : index
    %2 = vector.load %arg1[%c2, %c0_2] : memref<8x128xf32, #tpu.memory_space<vmem>>, vector<1x128xf32>
    %3 = vector.shape_cast %2 : vector<1x128xf32> to vector<1x128xf32>
    %4 = vector.broadcast %3 : vector<1x128xf32> to vector<8x128xf32>
    %c0_3 = arith.constant 0 : index
    %c0_4 = arith.constant 0 : index
    %5 = vector.load %arg2[%c0_3, %c0_4] : memref<8x8xf32, #tpu.memory_space<vmem>>, vector<8x1xf32>
    %c0_5 = arith.constant 0 : index
    %c1_6 = arith.constant 1 : index
    %6 = vector.load %arg2[%c0_5, %c1_6] : memref<8x8xf32, #tpu.memory_space<vmem>>, vector<8x1xf32>
    %c0_7 = arith.constant 0 : index
    %c2_8 = arith.constant 2 : index
    %7 = vector.load %arg2[%c0_7, %c2_8] : memref<8x8xf32, #tpu.memory_space<vmem>>, vector<8x1xf32>
    %c0_9 = arith.constant 0 : index
    %c3 = arith.constant 3 : index
    %8 = vector.load %arg2[%c0_9, %c3] : memref<8x8xf32, #tpu.memory_space<vmem>>, vector<8x1xf32>
    %c0_10 = arith.constant 0 : index
    %c4 = arith.constant 4 : index
    %9 = vector.load %arg2[%c0_10, %c4] : memref<8x8xf32, #tpu.memory_space<vmem>>, vector<8x1xf32>
    %c0_11 = arith.constant 0 : index
    %c5 = arith.constant 5 : index
    %10 = vector.load %arg2[%c0_11, %c5] : memref<8x8xf32, #tpu.memory_space<vmem>>, vector<8x1xf32>
    %11 = vector.broadcast %0 : vector<1x128xf32> to vector<8x128xf32>
    %12 = vector.broadcast %5 : vector<8x1xf32> to vector<8x128xf32>
    %13 = arith.subf %11, %12 : vector<8x128xf32>
    %14 = arith.mulf %13, %4 : vector<8x128xf32>
    %15 = vector.broadcast %7 : vector<8x1xf32> to vector<8x128xf32>
    %16 = arith.subf %14, %15 : vector<8x128xf32>
    %17 = vector.broadcast %1 : vector<1x128xf32> to vector<8x128xf32>
    %18 = vector.broadcast %6 : vector<8x1xf32> to vector<8x128xf32>
    %19 = arith.subf %17, %18 : vector<8x128xf32>
    %20 = arith.mulf %19, %4 : vector<8x128xf32>
    %21 = vector.broadcast %8 : vector<8x1xf32> to vector<8x128xf32>
    %22 = arith.subf %20, %21 : vector<8x128xf32>
    %23 = arith.mulf %16, %16 : vector<8x128xf32>
    %24 = vector.broadcast %9 : vector<8x1xf32> to vector<8x128xf32>
    %25 = arith.mulf %23, %24 : vector<8x128xf32>
    %26 = arith.mulf %22, %22 : vector<8x128xf32>
    %27 = vector.broadcast %10 : vector<8x1xf32> to vector<8x128xf32>
    %28 = arith.mulf %26, %27 : vector<8x128xf32>
    %29 = arith.addf %25, %28 : vector<8x128xf32>
    %30 = math.exp %29 : vector<8x128xf32>
    %c0_12 = arith.constant 0 : index
    %c0_13 = arith.constant 0 : index
    %31 = vector.load %arg3[%c0_12, %c0_13] : memref<8x128xf32, #tpu.memory_space<vmem>>, vector<8x128xf32>
    tpu.vector_store %arg3[%c0_12, %c0_13], %30 {strides = array<i32>} : memref<8x128xf32, #tpu.memory_space<vmem>>, vector<8x128xf32>,
    return
  }
  func.func @transform_0(%arg0: i32) -> (i32, i32) {
    %c0_i32 = arith.constant 0 : i32
    %c0_i32_0 = arith.constant 0 : i32
    return %c0_i32, %arg0 : i32, i32
  }
  func.func @transform_1(%arg0: i32) -> (i32, i32) {
    %c0_i32 = arith.constant 0 : i32
    %c0_i32_0 = arith.constant 0 : i32
    %c0_i32_1 = arith.constant 0 : i32
    return %c0_i32, %c0_i32_0 : i32, i32
  }
  func.func @transform_2(%arg0: i32) -> (i32, i32) {
    %c0_i32 = arith.constant 0 : i32
    %c0_i32_0 = arith.constant 0 : i32
    return %c0_i32, %arg0 : i32, i32
  }
}

</mosaic_0001>

<bundles_post_ra>
// kernel: tpu_custom_call.1
= control target key start
LH: loop header
LB: loop body
LE: loop exit
PB: predicated region body
PF: predicated region fallthrough
CT: control target
= control target key end

     0   :  { %7 = vsyncpa [#allocation3], 0  ;;  %s259_s0 = inlined_call_operand.hbm [shape: f32[8,128], index: 0, kind: input, shape index: {}]   ;;  %s260_s1 = inlined_call_operand.hbm [shape: f32[8,8], index: 1, kind: input, shape index: {}]   ;;  %s261_s2 = inlined_call_operand.hbm [shape: f32[8,128], index: 2, kind: output, shape index: {}]  }
   0x1   :  { %8 = vsyncpa [#allocation6], 0 }
   0x2   :  { %9 = vsyncpa [#allocation4], 0  ;;  %s199_s9 = smov [#allocation2]   ;;  %s200_s11 = smov [#allocation5]  }
   0x3   :  { %s16_s10 = sshll.u32 %s199_s9, 4  ;;  %s26_s12 = sshll.u32 %s200_s11, 4  ;;  %s17_s10 = int_to_ptr.vmem [resolvable:$true] %s16_s10  ;;  %s27_s12 = int_to_ptr.vmem [resolvable:$true] %s26_s12 }
   0x4   :  { %s127_s15 = scalar_lea.hbm %s259_s0, 128 }
   0x5   :  { %p128_p0 = scmp.ne.s32.totalorder %s259_s0, %s127_s15  ;;  %p131_p1 = scmp.lt.u32.totalorder %s127_s15, %s259_s0 }
   0x7   :  { %p133_p2 = pnand %p131_p1, %p128_p0 }
   0x9   :  { %136 = shalt.err (!%p133_p2)
}
   0xa   :  { %s137_s20 = scalar_lea.vmem %s17_s10, 128  ;;  %p142_p4 = scmp.lt.s32.totalorder %s17_s10, %s17_s10 }
   0xb   :  { %p138_p3 = scmp.ne.s32.totalorder %s17_s10, %s137_s20  ;;  %p143_p5 = scmp.lt.s32.totalorder %s137_s20, %s137_s20 }
   0xd   :  { %p144_p6 = por %p143_p5, %p142_p4 }
   0xf   :  { %p145_p7 = pnand %p144_p6, %p138_p3 }
  0x11   :  { %148 = shalt.err (!%p145_p7)
}
  0x12   :  { %19 = dma.hbm_to_vmem [thread:$0]  %s259_s0, 128, %s17_s10, [#allocation3]  }
  0x13   :  { %s149_s25 = scalar_lea.hbm %s260_s1, 128 }
  0x14   :  { %p150_p8 = scmp.ne.s32.totalorder %s260_s1, %s149_s25  ;;  %p153_p9 = scmp.lt.u32.totalorder %s149_s25, %s260_s1 }
  0x16   :  { %p155_p10 = pnand %p153_p9, %p150_p8 }
  0x18   :  { %158 = shalt.err (!%p155_p10)
}
  0x19   :  { %s159_s30 = scalar_lea.vmem %s27_s12, 128  ;;  %p164_p12 = scmp.lt.s32.totalorder %s27_s12, %s27_s12 }
  0x1a   :  { %p160_p11 = scmp.ne.s32.totalorder %s27_s12, %s159_s30  ;;  %p165_p13 = scmp.lt.s32.totalorder %s159_s30, %s159_s30 }
  0x1c   :  { %p166_p0 = por %p165_p13, %p164_p12 }
  0x1e   :  { %p167_p1 = pnand %p166_p0, %p160_p11 }
  0x20   :  { %170 = shalt.err (!%p167_p1)
}
  0x21   :  { %29 = dma.hbm_to_vmem [thread:$0]  %s260_s1, 128, %s27_s12, [#allocation6]  }
  0x22   :  { %193 = dma.done.wait [#allocation3], 128  }
  0x23   :  { %194 = vsyncadd [#allocation3], 4294967168 }
  0x24   :  { %195 = dma.done.wait [#allocation6], 128  }
  0x25   :  { %196 = vsyncadd [#allocation6], 4294967168  ;;  %v201_v0 = vmov 2   ;;  %v202_v1 = vmov 0   ;;  %v43_v2 = vld [vmem:[#allocation5] sm:$0xff]  ;;  %v203_v3 = vmov 3  }
  0x26   :  { %121 = vset.pattern.permute.xlu1 %v201_v0  ;;  %119 = vset.pattern.permute.xlu0 %v202_v1  ;;  %v204_v4 = vmov 1   ;;  %v205_v5 = vmov 4   ;;  %v206_v6 = vmov 5   ;;  %v108_v7 = vld [vmem:[#allocation2] ss:$0 sm:$0xff]  ;;  %s207_s1 = smov [#allocation7]  }
  0x27   :  { %56 = vperm.xlu1 %121, %v43_v2   ;;  %50 = vperm.xlu0 %119, %v43_v2   ;;  %v107_v11 = vld [vmem:[#allocation2 + $0x2] ss:$0 sm:$0xff]  ;;  %v109_v12 = vld [vmem:[#allocation2 + $0x1] ss:$0 sm:$0xff]  ;;  %s97_s4 = sshll.u32 %s207_s1, 4  ;;  %s98_s4 = int_to_ptr.vmem [resolvable:$true] %s97_s4 }
  0x28   :  { %s171_s5 = scalar_lea.vmem %s98_s4, 128  ;;  %p176_p3 = scmp.lt.s32.totalorder %s98_s4, %s98_s4 }
  0x29   :  { %p172_p2 = scmp.ne.s32.totalorder %s98_s4, %s171_s5  ;;  %p177_p4 = scmp.lt.s32.totalorder %s171_s5, %s171_s5 }
  0x2b   :  { %122 = vset.pattern.permute.xlu1 %v203_v3  ;;  %120 = vset.pattern.permute.xlu0 %v204_v4  ;;  %p178_p5 = por %p177_p4, %p176_p3 }
  0x2c   :  { %71 = vperm.xlu1 %122, %v43_v2   ;;  %65 = vperm.xlu0 %120, %v43_v2  }
  0x2d   :  { %p179_p6 = pnand %p178_p5, %p172_p2 }
  0x30   :  { %123 = vset.pattern.permute.xlu1 %v205_v5  ;;  %124 = vset.pattern.permute.xlu0 %v206_v6 }
  0x31   :  { %77 = vperm.xlu1 %123, %v43_v2   ;;  %83 = vperm.xlu0 %124, %v43_v2  }
  0xa6   :  { %v51_v8 = vpop.permute.xlu0 %50  ;;  %v57_v9 = vpop.permute.xlu1 %56 }
  0xa7   :  { %v53_v10 = vsub.f32 %v108_v7, %v51_v8 }
  0xa9   :  { %v54_v13 = vmul.f32 %v107_v11, %v53_v10 }
  0xab   :  { %v66_v14 = vpop.permute.xlu0 %65  ;;  %v72_v15 = vpop.permute.xlu1 %71  ;;  %v59_v17 = vsub.f32 %v54_v13, %v57_v9 }
  0xac   :  { %v68_v16 = vsub.f32 %v109_v12, %v66_v14 }
  0xad   :  { %v75_v22 = vmul.f32 %v59_v17, %v59_v17 }
  0xae   :  { %v69_v18 = vmul.f32 %v107_v11, %v68_v16 }
  0xb0   :  { %v74_v19 = vsub.f32 %v69_v18, %v72_v15  ;;  %v78_v20 = vpop.permute.xlu1 %77  ;;  %v84_v21 = vpop.permute.xlu0 %83 }
  0xb1   :  { %v80_v24 = vmul.f32 %v78_v20, %v75_v22 }
  0xb2   :  { %v81_v23 = vmul.f32 %v74_v19, %v74_v19 }
  0xb4   :  { %v86_v25 = vmul.f32 %v84_v21, %v81_v23 }
  0xb6   :  { %v87_v26 = vadd.f32 %v86_v25, %v80_v24 }
  0xb8   :  { %v88_v27 = vmul.f32 1.442695, %v87_v26 }
  0xba   :  { %125 = vpow2.f32 %v88_v27 }
  0xc4   :  { %v126_v28 = vpop.eup %125 }
  0xc5   :  { %90 = vst [vmem:[#allocation7] sm:$0xff] %v126_v28 }
  0xc6   :  { %182 = shalt.err (!%p179_p6)
}
  0xc7   :  { %s183_s8 = scalar_lea.hbm %s261_s2, 128 }
  0xc8   :  { %p184_p7 = scmp.ne.s32.totalorder %s261_s2, %s183_s8  ;;  %p187_p8 = scmp.lt.u32.totalorder %s183_s8, %s261_s2 }
  0xca   :  { %p189_p9 = pnand %p187_p8, %p184_p7 }
  0xcc   :  { %192 = shalt.err (!%p189_p9)
}
  0xcd   :  { %100 = dma.vmem_to_hbm [thread:$0]  %s98_s4, 128, %s261_s2, [#allocation4]  }
  0xce   :  { %197 = dma.done.wait [#allocation4], 128  }
  0xcf   :  { %198 = vsyncadd [#allocation4], 4294967168 }
  0xd0   :  { %104 = vsyncpa [#allocation3], 1 }
  0xd1   :  { %105 = vsyncpa [#allocation6], 1 }
  0xd2   :  { %106 = vsyncpa [#allocation4], 1 }

</bundles_post_ra>
